<compile_context>
chip_gen: v7x
topology: tpu7x:2x2x1
jax: 0.10.0
libtpu: 0.0.40
codegen_flags: <defaults>
</compile_context>

<pallas_src>
import jax
import jax.numpy as jnp
from jax.experimental import pallas as pl
from jax.experimental.pallas import tpu as pltpu


# ---------------------------------------------------------------------------
# Parameter folding (preprocess -> conv, BatchNorm -> fc1).  Pure JAX, tiny.
# ---------------------------------------------------------------------------
def fold_params(p):
    c_in = p["wb"].shape[1]
    mean = p["pixel_mean"].reshape(1, c_in)             # (1, C)
    std = p["pixel_std"].reshape(1, c_in)               # (1, C)

    # conv((x - m)/s) = (W/s) @ x + (b - W @ (m/s))
    wp = p["wb"] / std                                   # (256, C)
    bp = p["bb"] - jnp.sum(p["wb"] * (mean / std), axis=1)   # (256,)

    # BatchNorm1d(eval) folded into fc1:
    #   s*(W1 x + b1 - rm) + beta = (s*W1) x + (s*(b1 - rm) + beta)
    s = p["bn_gamma"] * jax.lax.rsqrt(p["bn_rvar"] + 1e-5)   # (64,)
    w1f = p["w1"] * s[:, None]                           # (64, 256)
    b1f = (p["b1"] - p["bn_rmean"]) * s + p["bn_beta"]   # (64,)

    return {
        "wp": wp,                                        # (256, C)  f32
        "bp": bp.reshape(-1, 1),                         # (256, 1)
        "w1f": w1f,                                      # (64, 256)
        "b1f": b1f.reshape(-1, 1),                       # (64, 1)
        "w2t": p["w2"],                                  # (num_classes, 64)
        "b2c": p["b2"].reshape(-1, 1),                   # (num_classes, 1)
    }


def _round_up(n, m):
    return (n + m - 1) // m * m


def _plan_spatial(hw, cap=8192):
    """Return (hw_tile, padded_hw, pad).

    hw_tile is always a multiple of 128 (lane-aligned), padded_hw is a
    multiple of hw_tile, pad = padded_hw - hw (zero-padded pixels, corrected
    exactly in the kernel head).  cap bounds the feat temporary (256*tile*4B)
    so the kernel never silently exceeds the scoped-VMEM budget.
    """
    cap = max(128, (cap // 128) * 128)
    hw128 = _round_up(hw, 128)
    if hw128 <= cap:
        return hw128, hw128, hw128 - hw
    # Prefer a 128-multiple divisor of the 128-rounded extent (no extra pad).
    for t in range(cap, 127, -128):
        if hw128 % t == 0:
            return t, hw128, hw128 - hw
    padded = _round_up(hw, cap)
    return cap, padded, padded - hw


# ---------------------------------------------------------------------------
# Fused kernel: (preprocess+conv)->ReLU->pool accumulate; head on last tile.
# ---------------------------------------------------------------------------
def _make_fused_kernel(hw_tile, true_hw, pad):
    n_groups = hw_tile // 128
    inv_hw = 1.0 / float(true_hw)

    def kernel(x_ref, wp_ref, bp_ref, w1_ref, b1_ref, w2_ref, b2_ref,
               out_ref, acc_ref):
        k = pl.program_id(1)

        @pl.when(k == 0)
        def _init():
            acc_ref[...] = jnp.zeros_like(acc_ref)

        # --- 1x1 conv (preprocess folded) on the MXU: bf16 in, f32 acc ------
        x = x_ref[0].astype(jnp.bfloat16)                 # (C, hw_tile)
        feat = jnp.dot(wp_ref[...], x,                    # (256, hw_tile) f32
                       preferred_element_type=jnp.float32)
        feat = jnp.maximum(feat + bp_ref[...], 0.0)       # bias + ReLU

        # --- lane-dense partial spatial sum: lane-aligned full-vreg VPU adds
        partial = feat[:, 0:128]
        for j in range(1, n_groups):
            partial = partial + feat[:, j * 128:(j + 1) * 128]
        acc_ref[...] += partial                            # (256, 128)

        # --- head: runs once per batch element ------------------------------
        @pl.when(k == pl.num_programs(1) - 1)
        def _head():
            # single cross-lane reduce per batch element
            row_sum = jnp.sum(acc_ref[...], axis=1, keepdims=True)   # (256, 1)
            if pad:
                # zero-padded pixels contributed exactly ReLU(bias) each
                row_sum = row_sum - float(pad) * jnp.maximum(bp_ref[...], 0.0)
            pooled = row_sum * inv_hw                                 # avg pool

            # fc1 (BatchNorm folded) + ReLU
            h = jnp.dot(w1_ref[...], pooled,
                        preferred_element_type=jnp.float32) + b1_ref[...]
            h = jnp.maximum(h, 0.0)                                   # (64, 1)
            # fc2
            logits = jnp.dot(w2_ref[...], h,
                             preferred_element_type=jnp.float32) + b2_ref[...]
            # softmax over the class axis -- EXACT normalization
            m = jnp.max(logits, axis=0, keepdims=True)
            e = jnp.exp(logits - m)
            out_ref[0] = e / jnp.sum(e, axis=0, keepdims=True)        # (nc, 1)

    return kernel


# ---------------------------------------------------------------------------
# Full forward (single pallas_call)
# ---------------------------------------------------------------------------
def yoga_pose_forward(x_nchw, params, hw_tile_cap=8192):
    B, C, H, W = x_nchw.shape
    HW = H * W
    f = fold_params(params)
    num_classes = f["w2t"].shape[0]

    hw_tile, padded_hw, pad = _plan_spatial(HW, hw_tile_cap)
    num_k = padded_hw // hw_tile

    # Zero-copy view of NCHW as (B, C, HW); pad the spatial axis only if
    # needed (padded pixels are exactly corrected in the kernel head).
    x_rows = x_nchw.reshape(B, C, HW)
    if pad:
        x_rows = jnp.pad(x_rows, ((0, 0), (0, 0), (0, pad)))

    # Conv weights pre-cast to bf16 (native MXU input on v5e/v6e/v7x).
    wp_bf16 = f["wp"].astype(jnp.bfloat16)

    # Explicit scoped-VMEM budget with headroom (dominant temp: 256*tile*4B).
    feat_bytes = 256 * hw_tile * 4
    vmem_limit = int(min(4 * feat_bytes + (8 << 20), 96 << 20))

    kernel = _make_fused_kernel(hw_tile, HW, pad)
    out = pl.pallas_call(
        kernel,
        out_shape=jax.ShapeDtypeStruct((B, num_classes, 1), jnp.float32),
        grid_spec=pltpu.PrefetchScalarGridSpec(
            num_scalar_prefetch=0,
            grid=(B, num_k),
            in_specs=[
                pl.BlockSpec((1, C, hw_tile), lambda b, k: (b, 0, k)),
                pl.BlockSpec((256, C), lambda b, k: (0, 0)),
                pl.BlockSpec((256, 1), lambda b, k: (0, 0)),
                pl.BlockSpec((64, 256), lambda b, k: (0, 0)),
                pl.BlockSpec((64, 1), lambda b, k: (0, 0)),
                pl.BlockSpec((num_classes, 64), lambda b, k: (0, 0)),
                pl.BlockSpec((num_classes, 1), lambda b, k: (0, 0)),
            ],
            out_specs=pl.BlockSpec((1, num_classes, 1), lambda b, k: (b, 0, 0)),
            scratch_shapes=[pltpu.VMEM((256, 128), jnp.float32)],
        ),
        compiler_params=pltpu.CompilerParams(
            dimension_semantics=("parallel", "arbitrary"),
            vmem_limit_bytes=vmem_limit),
    )(x_rows, wp_bf16, f["bp"], f["w1f"], f["b1f"], f["w2t"], f["b2c"])
    return out.reshape(B, num_classes)


# ---------------------------------------------------------------------------
# Pure-JAX reference (unfused, mirrors the PyTorch forward) for verification.
# ---------------------------------------------------------------------------
def reference_forward(x_nchw, p):
    x = (x_nchw - p["pixel_mean"]) / p["pixel_std"]                    # preprocess
    feat = jnp.einsum("bchw,oc->bohw", x, p["wb"]) \
        + p["bb"][None, :, None, None]                                 # 1x1 conv
    feat = jnp.maximum(feat, 0.0)                                      # ReLU
    pooled = feat.mean(axis=(2, 3))                                    # avg pool
    h = pooled @ p["w1"].T + p["b1"]                                   # fc1
    s = p["bn_gamma"] * jax.lax.rsqrt(p["bn_rvar"] + 1e-5)             # bn1 (eval)
    h = (h - p["bn_rmean"]) * s + p["bn_beta"]
    h = jnp.maximum(h, 0.0)                                            # relu
    logits = h @ p["w2"].T + p["b2"]                                   # fc2
    return jax.nn.softmax(logits, axis=1)                              # softmax


def init_params(key, c_in=3, num_classes=10):
    ks = jax.random.split(key, 5)
    base_mean = ([0.485, 0.456, 0.406] * ((c_in + 2) // 3))[:c_in]
    base_std = ([0.229, 0.224, 0.225] * ((c_in + 2) // 3))[:c_in]
    p = {}
    p["pixel_mean"] = jnp.array(base_mean, jnp.float32).reshape(c_in, 1, 1)
    p["pixel_std"] = jnp.array(base_std, jnp.float32).reshape(c_in, 1, 1)
    # backbone stand-in: 1x1 conv C_in -> 256 (PyTorch (out, in) layout)
    p["wb"] = jax.random.normal(ks[0], (256, c_in), jnp.float32) * 0.1
    p["bb"] = jnp.zeros((256,), jnp.float32)
    # fc1: Linear(256, 64)
    p["w1"] = jax.random.normal(ks[1], (64, 256), jnp.float32) * 0.05
    p["b1"] = jax.random.normal(ks[2], (64,), jnp.float32) * 0.01
    # bn1: BatchNorm1d(64), eval-mode stats
    p["bn_gamma"] = jnp.ones((64,), jnp.float32)
    p["bn_beta"] = jnp.zeros((64,), jnp.float32)
    p["bn_rmean"] = jnp.zeros((64,), jnp.float32)
    p["bn_rvar"] = jnp.ones((64,), jnp.float32)
    # fc2: Linear(64, num_classes)
    p["w2"] = jax.random.normal(ks[3], (num_classes, 64), jnp.float32) * 0.05
    p["b2"] = jax.random.normal(ks[4], (num_classes,), jnp.float32) * 0.01
    return p


if __name__ == "__main__":
    key = jax.random.PRNGKey(0)
    k_x, k_p = jax.random.split(key)

    B, C, H, W = 2, 3, 16, 16
    x = jax.random.uniform(k_x, (B, C, H, W), jnp.float32)
    params = init_params(k_p, c_in=C, num_classes=10)

    out = yoga_pose_forward(x, params)
    out = jax.block_until_ready(out)

    ref = reference_forward(x, params)

    assert out.shape == (B, 10)
    # exact softmax normalization in the kernel -> rows sum to 1
    assert jnp.allclose(jnp.sum(out, axis=1), 1.0, atol=1e-3)
    # bf16 conv (f32 accumulation) vs f32 reference
    assert jnp.allclose(out, ref, atol=5e-3, rtol=5e-3)
    print("KERNEL_OK")
</pallas_src>

<mosaic_0001>
module attributes {stable_mosaic.version = 11 : i64} {
  func.func @kernel(%arg0: i32, %arg1: i32, %arg2: memref<1x3x256xf32, #tpu.memory_space<vmem>>, %arg3: memref<256x3xbf16, #tpu.memory_space<vmem>>, %arg4: memref<256x1xf32, #tpu.memory_space<vmem>>, %arg5: memref<64x256xf32, #tpu.memory_space<vmem>>, %arg6: memref<64x1xf32, #tpu.memory_space<vmem>>, %arg7: memref<10x64xf32, #tpu.memory_space<vmem>>, %arg8: memref<10x1xf32, #tpu.memory_space<vmem>>, %arg9: memref<1x10x1xf32, #tpu.memory_space<vmem>>, %arg10: memref<256x128xf32, #tpu.memory_space<vmem>>) attributes {dimension_semantics = [#tpu.dimension_semantics<parallel>, #tpu.dimension_semantics<arbitrary>], iteration_bounds = array<i64: 2, 1>, scalar_prefetch = 0 : i64, scratch_operands = 1 : i64, tpu.core_type = #tpu.core_type<tc>, window_params = [{transform_indices = @transform_0, window_bounds = array<i64: 1, 3, 256>}, {pipeline_mode = #tpu.pipeline_mode<synchronous>, transform_indices = @transform_1, window_bounds = array<i64: 256, 3>}, {pipeline_mode = #tpu.pipeline_mode<synchronous>, transform_indices = @transform_2, window_bounds = array<i64: 256, 1>}, {pipeline_mode = #tpu.pipeline_mode<synchronous>, transform_indices = @transform_3, window_bounds = array<i64: 64, 256>}, {pipeline_mode = #tpu.pipeline_mode<synchronous>, transform_indices = @transform_4, window_bounds = array<i64: 64, 1>}, {pipeline_mode = #tpu.pipeline_mode<synchronous>, transform_indices = @transform_5, window_bounds = array<i64: 10, 64>}, {pipeline_mode = #tpu.pipeline_mode<synchronous>, transform_indices = @transform_6, window_bounds = array<i64: 10, 1>}, {transform_indices = @transform_7, window_bounds = array<i64: 1, 10, 1>}]} {
    %c0_i32 = arith.constant 0 : i32
    %0 = arith.cmpi eq, %arg1, %c0_i32 : i32
    %1 = arith.extui %0 : i1 to i32
    %c0_i32_0 = arith.constant 0 : i32
    %2 = arith.cmpi ne, %1, %c0_i32_0 : i32
    scf.if %2 {
      %cst_14 = arith.constant 0.000000e+00 : f32
      %22 = vector.broadcast %cst_14 : f32 to vector<256x128xf32>
      %c0_15 = arith.constant 0 : index
      %c0_16 = arith.constant 0 : index
      %23 = vector.load %arg10[%c0_15, %c0_16] : memref<256x128xf32, #tpu.memory_space<vmem>>, vector<256x128xf32>
      tpu.vector_store %arg10[%c0_15, %c0_16], %22 {strides = array<i32>} : memref<256x128xf32, #tpu.memory_space<vmem>>, vector<256x128xf32>,
    } else {
    }
    %c0 = arith.constant 0 : index
    %c0_1 = arith.constant 0 : index
    %c0_2 = arith.constant 0 : index
    %3 = vector.load %arg2[%c0, %c0_1, %c0_2] : memref<1x3x256xf32, #tpu.memory_space<vmem>>, vector<1x3x256xf32>
    %4 = vector.shape_cast %3 : vector<1x3x256xf32> to vector<3x256xf32>
    %5 = arith.truncf %4 : vector<3x256xf32> to vector<3x256xbf16>
    %c0_3 = arith.constant 0 : index
    %c0_4 = arith.constant 0 : index
    %6 = vector.load %arg3[%c0_3, %c0_4] : memref<256x3xbf16, #tpu.memory_space<vmem>>, vector<256x3xbf16>
    %cst = arith.constant dense<0.000000e+00> : vector<256x256xf32>
    %7 = tpu.matmul %6, %5, %cst {dimension_numbers = #tpu.dot_dimension_numbers<[1], [0], [0], [1], [0, 0, 1, 1], [], []>} : vector<256x3xbf16>, vector<3x256xbf16>, vector<256x256xf32> -> vector<256x256xf32>
    %c0_5 = arith.constant 0 : index
    %c0_6 = arith.constant 0 : index
    %8 = vector.load %arg4[%c0_5, %c0_6] : memref<256x1xf32, #tpu.memory_space<vmem>>, vector<256x1xf32>
    %9 = vector.broadcast %8 : vector<256x1xf32> to vector<256x256xf32>
    %10 = arith.addf %7, %9 : vector<256x256xf32>
    %cst_7 = arith.constant 0.000000e+00 : f32
    %11 = vector.broadcast %cst_7 : f32 to vector<256x256xf32>
    %12 = arith.maximumf %10, %11 : vector<256x256xf32>
    %13 = vector.extract_strided_slice %12 {offsets = [0, 0], sizes = [256, 128], strides = [1, 1]} : vector<256x256xf32> to vector<256x128xf32>
    %14 = vector.extract_strided_slice %12 {offsets = [0, 128], sizes = [256, 128], strides = [1, 1]} : vector<256x256xf32> to vector<256x128xf32>
    %15 = arith.addf %13, %14 : vector<256x128xf32>
    %c0_8 = arith.constant 0 : index
    %c0_9 = arith.constant 0 : index
    %16 = vector.load %arg10[%c0_8, %c0_9] : memref<256x128xf32, #tpu.memory_space<vmem>>, vector<256x128xf32>
    %17 = arith.addf %16, %15 : vector<256x128xf32>
    %c0_10 = arith.constant 0 : index
    %c0_11 = arith.constant 0 : index
    %18 = vector.load %arg10[%c0_10, %c0_11] : memref<256x128xf32, #tpu.memory_space<vmem>>, vector<256x128xf32>
    tpu.vector_store %arg10[%c0_10, %c0_11], %17 {strides = array<i32>} : memref<256x128xf32, #tpu.memory_space<vmem>>, vector<256x128xf32>,
    %c0_i32_12 = arith.constant 0 : i32
    %19 = arith.cmpi eq, %arg1, %c0_i32_12 : i32
    %20 = arith.extui %19 : i1 to i32
    %c0_i32_13 = arith.constant 0 : i32
    %21 = arith.cmpi ne, %20, %c0_i32_13 : i32
    scf.if %21 {
      %c0_14 = arith.constant 0 : index
      %c0_15 = arith.constant 0 : index
      %22 = vector.load %arg10[%c0_14, %c0_15] : memref<256x128xf32, #tpu.memory_space<vmem>>, vector<256x128xf32>
      %cst_16 = arith.constant dense<0.000000e+00> : vector<256xf32>
      %23 = vector.multi_reduction <add>, %22, %cst_16 [1] : vector<256x128xf32> to vector<256xf32>
      %24 = vector.shape_cast %23 : vector<256xf32> to vector<256x1xf32>
      %cst_17 = arith.constant 3.906250e-03 : f32
      %25 = vector.broadcast %cst_17 : f32 to vector<256x1xf32>
      %26 = arith.mulf %24, %25 : vector<256x1xf32>
      %c0_18 = arith.constant 0 : index
      %c0_19 = arith.constant 0 : index
      %27 = vector.load %arg5[%c0_18, %c0_19] : memref<64x256xf32, #tpu.memory_space<vmem>>, vector<64x256xf32>
      %cst_20 = arith.constant dense<0.000000e+00> : vector<64x1xf32>
      %28 = tpu.matmul %27, %26, %cst_20 {dimension_numbers = #tpu.dot_dimension_numbers<[1], [0], [0], [1], [0, 0, 1, 1], [], []>} : vector<64x256xf32>, vector<256x1xf32>, vector<64x1xf32> -> vector<64x1xf32>
      %c0_21 = arith.constant 0 : index
      %c0_22 = arith.constant 0 : index
      %29 = vector.load %arg6[%c0_21, %c0_22] : memref<64x1xf32, #tpu.memory_space<vmem>>, vector<64x1xf32>
      %30 = arith.addf %28, %29 : vector<64x1xf32>
      %cst_23 = arith.constant 0.000000e+00 : f32
      %31 = vector.broadcast %cst_23 : f32 to vector<64x1xf32>
      %32 = arith.maximumf %30, %31 : vector<64x1xf32>
      %c0_24 = arith.constant 0 : index
      %c0_25 = arith.constant 0 : index
      %33 = vector.load %arg7[%c0_24, %c0_25] : memref<10x64xf32, #tpu.memory_space<vmem>>, vector<10x64xf32>
      %cst_26 = arith.constant dense<0.000000e+00> : vector<10x1xf32>
      %34 = tpu.matmul %33, %32, %cst_26 {dimension_numbers = #tpu.dot_dimension_numbers<[1], [0], [0], [1], [0, 0, 1, 1], [], []>} : vector<10x64xf32>, vector<64x1xf32>, vector<10x1xf32> -> vector<10x1xf32>
      %c0_27 = arith.constant 0 : index
      %c0_28 = arith.constant 0 : index
      %35 = vector.load %arg8[%c0_27, %c0_28] : memref<10x1xf32, #tpu.memory_space<vmem>>, vector<10x1xf32>
      %36 = arith.addf %34, %35 : vector<10x1xf32>
      %cst_29 = arith.constant dense<0xFF800000> : vector<1xf32>
      %37 = vector.multi_reduction <maximumf>, %36, %cst_29 [0] : vector<10x1xf32> to vector<1xf32>
      %38 = vector.shape_cast %37 : vector<1xf32> to vector<1x1xf32>
      %39 = vector.broadcast %38 : vector<1x1xf32> to vector<10x1xf32>
      %40 = arith.subf %36, %39 : vector<10x1xf32>
      %41 = math.exp %40 : vector<10x1xf32>
      %cst_30 = arith.constant dense<0.000000e+00> : vector<1xf32>
      %42 = vector.multi_reduction <add>, %41, %cst_30 [0] : vector<10x1xf32> to vector<1xf32>
      %43 = vector.shape_cast %42 : vector<1xf32> to vector<1x1xf32>
      %44 = vector.broadcast %43 : vector<1x1xf32> to vector<10x1xf32>
      %45 = arith.divf %41, %44 : vector<10x1xf32>
      %c0_31 = arith.constant 0 : index
      %c0_32 = arith.constant 0 : index
      %c0_33 = arith.constant 0 : index
      %46 = vector.load %arg9[%c0_31, %c0_32, %c0_33] : memref<1x10x1xf32, #tpu.memory_space<vmem>>, vector<1x10x1xf32>
      %47 = vector.shape_cast %46 : vector<1x10x1xf32> to vector<10x1xf32>
      %48 = vector.shape_cast %45 : vector<10x1xf32> to vector<1x10x1xf32>
      tpu.vector_store %arg9[%c0_31, %c0_32, %c0_33], %48 {strides = array<i32>} : memref<1x10x1xf32, #tpu.memory_space<vmem>>, vector<1x10x1xf32>,
    } else {
    }
    return
  }
  func.func @transform_0(%arg0: i32, %arg1: i32) -> (i32, i32, i32) {
    %c0_i32 = arith.constant 0 : i32
    %c0_i32_0 = arith.constant 0 : i32
    return %arg0, %c0_i32, %arg1 : i32, i32, i32
  }
  func.func @transform_1(%arg0: i32, %arg1: i32) -> (i32, i32) {
    %c0_i32 = arith.constant 0 : i32
    %c0_i32_0 = arith.constant 0 : i32
    %c0_i32_1 = arith.constant 0 : i32
    return %c0_i32, %c0_i32_0 : i32, i32
  }
  func.func @transform_2(%arg0: i32, %arg1: i32) -> (i32, i32) {
    %c0_i32 = arith.constant 0 : i32
    %c0_i32_0 = arith.constant 0 : i32
    %c0_i32_1 = arith.constant 0 : i32
    return %c0_i32, %c0_i32_0 : i32, i32
  }
  func.func @transform_3(%arg0: i32, %arg1: i32) -> (i32, i32) {
    %c0_i32 = arith.constant 0 : i32
    %c0_i32_0 = arith.constant 0 : i32
    %c0_i32_1 = arith.constant 0 : i32
    return %c0_i32, %c0_i32_0 : i32, i32
  }
  func.func @transform_4(%arg0: i32, %arg1: i32) -> (i32, i32) {
    %c0_i32 = arith.constant 0 : i32
    %c0_i32_0 = arith.constant 0 : i32
    %c0_i32_1 = arith.constant 0 : i32
    return %c0_i32, %c0_i32_0 : i32, i32
  }
  func.func @transform_5(%arg0: i32, %arg1: i32) -> (i32, i32) {
    %c0_i32 = arith.constant 0 : i32
    %c0_i32_0 = arith.constant 0 : i32
    %c0_i32_1 = arith.constant 0 : i32
    return %c0_i32, %c0_i32_0 : i32, i32
  }
  func.func @transform_6(%arg0: i32, %arg1: i32) -> (i32, i32) {
    %c0_i32 = arith.constant 0 : i32
    %c0_i32_0 = arith.constant 0 : i32
    %c0_i32_1 = arith.constant 0 : i32
    return %c0_i32, %c0_i32_0 : i32, i32
  }
  func.func @transform_7(%arg0: i32, %arg1: i32) -> (i32, i32, i32) {
    %c0_i32 = arith.constant 0 : i32
    %c0_i32_0 = arith.constant 0 : i32
    %c0_i32_1 = arith.constant 0 : i32
    return %arg0, %c0_i32, %c0_i32_0 : i32, i32, i32
  }
}

</mosaic_0001>

<bundles_post_ra>
// kernel: tpu_custom_call.1
= control target key start
LH: loop header
LB: loop body
LE: loop exit
PB: predicated region body
PF: predicated region fallthrough
CT: control target
= control target key end

     0   :  { %s1851_s24 = smov 0   ;;  %s1853_s25 = smov 0   ;;  %s2264_s0 = inlined_call_operand.vmem [shape: f32[2,3,256], index: 0, kind: input, shape index: {}]   ;;  %s2265_s1 = inlined_call_operand.vmem [shape: bf16[256,3], index: 1, kind: input, shape index: {}]   ;;  %s2266_s2 = inlined_call_operand.vmem [shape: f32[256,1], index: 2, kind: input, shape index: {}]   ;;  %s2267_s3 = inlined_call_operand.vmem [shape: f32[64,256], index: 3, kind: input, shape index: {}]   ;;  %s2268_s4 = inlined_call_operand.vmem [shape: f32[64,1], index: 4, kind: input, shape index: {}]   ;;  %s2269_s5 = inlined_call_operand.vmem [shape: f32[10,64], index: 5, kind: input, shape index: {}]   ;;  %s2270_s6 = inlined_call_operand.vmem [shape: f32[10,1], index: 6, kind: input, shape index: {}]   ;;  %s2271_s7 = inlined_call_operand.vmem [shape: f32[2,10,1], index: 7, kind: output, shape index: {}]  }
   0x1   :  { %s1855_s26 = smov 0  }
   0x2 LB: > { %s29_s27 = sadd.s32 1, %s1803_s25  ;;  %p1556_p0 = scmp.ge.s32.totalorder %s1807_s26, 1  ;;  %s1807_s26 = sphi %s1855_s26, %s17_s26   ;;  %s1803_s25 = sphi %s1853_s25, %s2273_s25   ;;  %s1799_s24 = sphi %s1851_s24, %s2272_s24  }
   0x3   : > { %p31_p1 = scmp.ge.s32.totalorder %s29_s27, 2  ;;  %p256_p2 = scmp.lt.s32.totalorder %s1807_s26, 3 }
   0x5   : > { %s2275_s27 = smov (%p31_p1, %s29_s27), 0  ;;  %p257_p3 = pnand %p1556_p0, %p256_p2 }
   0x6   : > { %p293_p4 = scmp.lt.s32.totalorder (!%p257_p3), %s1799_s24, 1  ;;  %vm703_vm0 = vcmask (!%p257_p3), 1040384   ;;  %v1809_v0 = vmov (!%p257_p3), 0   ;;  %vm704_vm1 = vcmask (!%p257_p3), 1041408   ;;  %v1810_v1 = vmov (!%p257_p3), 65535   ;;  %v1763_v10 = vld [vmem:[%s2265_s1] sm:$0xff] (!%p257_p3)  }
   0x7   : > { %260 = sbr.rel (%p257_p3) target bundleno = 1031 (0x407), region = 48  ;;  %745 = vmatprep.mubr.bf16.mxu0 (!%p257_p3), %v1809_v0  ;;  %855 = vmatprep.mubr.bf16.mxu1 (!%p257_p3), %v1809_v0  ;;  %v705_v2 = vsel (!%p257_p3), %vm703_vm0, 4294967295, %v1810_v1  ;;  %v1764_v11 = vld [vmem:[%s2265_s1 + $0x58] sm:$0xff] (!%p257_p3)   ;;  %v398_v12 = vld [vmem:[%s2266_s2 + $0x80] sm:$0xff] (!%p257_p3)  ;;  %vm654_vm2 = vcmask (!%p257_p3), 23552   ;;  %v399_v14 = vld [vmem:[%s2266_s2 + $0x88] sm:$0xff] (!%p257_p3) }
   0x8   : > { %1761 = vset.pattern.permute.xlu1 (!%p257_p3), %v1809_v0  ;;  %1760 = vset.pattern.permute.xlu0 (!%p257_p3), %v1809_v0  ;;  %v706_v5 = vsel (!%p257_p3), %vm704_vm1, %v705_v2, 0  ;;  %v382_v13 = vld [vmem:[%s2266_s2] sm:$0xff] (!%p257_p3)  ;;  %v383_v15 = vld [vmem:[%s2266_s2 + $0x8] sm:$0xff] (!%p257_p3)  ;;  %v400_v16 = vld [vmem:[%s2266_s2 + $0x90] sm:$0xff] (!%p257_p3)  ;;  %vm1370_vm3 = vcmask (!%p257_p3), 523264   ;;  %vm1454_vm4 = vcmask (!%p257_p3), 1024  }
   0x9   : > { %496 = vperm.xlu0 (!%p257_p3), %1760, %v398_v12   ;;  %416 = vperm.xlu1 (!%p257_p3), %1761, %v382_v13   ;;  %v401_v17 = vld [vmem:[%s2266_s2 + $0x98] sm:$0xff] (!%p257_p3)  ;;  %v1765_v18 = vld [vmem:[%s2265_s1 + $0x8] sm:$0xff] (!%p257_p3)   ;;  %v1766_v19 = vld [vmem:[%s2265_s1 + $0x60] sm:$0xff] (!%p257_p3)   ;;  %vm1452_vm5 = vcmask (!%p257_p3), 7168  }
   0xa   : > { %v384_v20 = vld [vmem:[%s2266_s2 + $0x10] sm:$0xff] (!%p257_p3)  ;;  %v385_v21 = vld [vmem:[%s2266_s2 + $0x18] sm:$0xff] (!%p257_p3)  ;;  %v402_v22 = vld [vmem:[%s2266_s2 + $0xa0] sm:$0xff] (!%p257_p3) }
   0xb   : > { %v403_v23 = vld [vmem:[%s2266_s2 + $0xa8] sm:$0xff] (!%p257_p3)  ;;  %v1767_v24 = vld [vmem:[%s2265_s1 + $0x10] sm:$0xff] (!%p257_p3)   ;;  %v386_v26 = vld [vmem:[%s2266_s2 + $0x20] sm:$0xff] (!%p257_p3) }
   0xc   : > { %v1768_v25 = vld [vmem:[%s2265_s1 + $0x68] sm:$0xff] (!%p257_p3)   ;;  %v404_v28 = vld [vmem:[%s2266_s2 + $0xb0] sm:$0xff] (!%p257_p3)  ;;  %v405_v29 = vld [vmem:[%s2266_s2 + $0xb8] sm:$0xff] (!%p257_p3) }
   0xd   : > { %501 = vperm.xlu0 (!%p257_p3), %1760, %v399_v14   ;;  %421 = vperm.xlu1 (!%p257_p3), %1761, %v383_v15   ;;  %v387_v27 = vld [vmem:[%s2266_s2 + $0x28] sm:$0xff] (!%p257_p3)  ;;  %v1769_v30 = vld [vmem:[%s2265_s1 + $0x18] sm:$0xff] (!%p257_p3)   ;;  %v1770_v31 = vld [vmem:[%s2265_s1 + $0x70] sm:$0xff] (!%p257_p3)  }
   0xe   : > { %s2277_s24 = smov (!%p293_p4, %s1799_s24), 1  ;;  %v388_v32 = vld [vmem:[%s2266_s2 + $0x30] sm:$0xff]  ;;  %v389_v33 = vld [vmem:[%s2266_s2 + $0x38] sm:$0xff]  ;;  %v406_v34 = vld [vmem:[%s2266_s2 + $0xc0] sm:$0xff] }
   0xf   : > { %s1597_s28 = sshll.u32 %s2277_s24, 3  ;;  %v407_v35 = vld [vmem:[%s2266_s2 + $0xc8] sm:$0xff]  ;;  %v1771_v36 = vld [vmem:[%s2265_s1 + $0x20] sm:$0xff]   ;;  %v1772_v37 = vld [vmem:[%s2265_s1 + $0x78] sm:$0xff]   ;;  %s1598_s9 = sshll.u32 %s2277_s24, 4 }
  0x10   : > { %s300_s8 = scalar_lea.vmem %s2264_s0, %s1597_s28  ;;  %v390_v38 = vld [vmem:[%s2266_s2 + $0x40] sm:$0xff]  ;;  %v391_v39 = vld [vmem:[%s2266_s2 + $0x48] sm:$0xff]  ;;  %v408_v40 = vld [vmem:[%s2266_s2 + $0xd0] sm:$0xff]  ;;  %s306_s12 = scalar_lea.vmem %s2271_s7, %s1598_s9 }
  0x11   : > { %v344_v3 = vld [vmem:[%s300_s8] sm:$0x77]  ;;  %506 = vperm.xlu0 %1760, %v400_v16   ;;  %511 = vperm.xlu1 %1761, %v401_v17   ;;  %v409_v41 = vld [vmem:[%s2266_s2 + $0xd8] sm:$0xff]  ;;  %v1773_v42 = vld [vmem:[%s2265_s1 + $0x28] sm:$0xff]  }
  0x12   : > { %v346_v4 = vcombine.high %v344_v3, %v344_v3  ;;  %v348_v6 = vpack.c.bf16 %v344_v3, %v344_v3  ;;  %v392_v43 = vld [vmem:[%s2266_s2 + $0x50] sm:$0xff]  ;;  %v393_v44 = vld [vmem:[%s2266_s2 + $0x58] sm:$0xff]  ;;  %v410_v45 = vld [vmem:[%s2266_s2 + $0xe0] sm:$0xff] }
  0x13   : > { %v411_v46 = vld [vmem:[%s2266_s2 + $0xe8] sm:$0xff]  ;;  %v1774_v47 = vld [vmem:[%s2265_s1 + $0x30] sm:$0xff]   ;;  %v394_v48 = vld [vmem:[%s2266_s2 + $0x60] sm:$0xff] }
  0x14   : > { %v349_v7 = vpack.c.bf16 %v346_v4, %v346_v4  ;;  %v708_v8 = vand.u32 %v706_v5, %v348_v6  ;;  %v395_v49 = vld [vmem:[%s2266_s2 + $0x68] sm:$0xff]  ;;  %v412_v50 = vld [vmem:[%s2266_s2 + $0xf0] sm:$0xff]  ;;  %v413_v51 = vld [vmem:[%s2266_s2 + $0xf8] sm:$0xff] }
  0x15   : > { %426 = vperm.xlu0 %1760, %v384_v20   ;;  %431 = vperm.xlu1 %1761, %v385_v21   ;;  %v1775_v52 = vld [vmem:[%s2265_s1 + $0x38] sm:$0xff]   ;;  %v396_v53 = vld [vmem:[%s2266_s2 + $0x70] sm:$0xff]  ;;  %v1776_v55 = vld [vmem:[%s2265_s1 + $0x40] sm:$0xff]  }
  0x16   : > { %v711_v9 = vand.u32 %v706_v5, %v349_v7  ;;  %v397_v54 = vld [vmem:[%s2266_s2 + $0x78] sm:$0xff]  ;;  %v1777_v56 = vld [vmem:[%s2265_s1 + $0x48] sm:$0xff]   ;;  %v1778_v57 = vld [vmem:[%s2265_s1 + $0x50] sm:$0xff]  }
  0x18   : > { %713 = vmatprep.subr.bf16.mxu0 %v711_v9  ;;  %1732 = vmatprep.subr.bf16.mxu1 %v711_v9 }
  0x19   : > { %714 = vmatpush1.bf16.msra.mxu0 %v708_v8  ;;  %1733 = vmatpush1.bf16.msra.mxu1 %v708_v8 }
  0x1a   : > { %516 = vperm.xlu0 %1760, %v402_v22   ;;  %521 = vperm.xlu1 %1761, %v403_v23  }
  0x1c   : > { %1577 = vmatmul.mubr.msk.bf16.vlgmr.msra.gmra.mrb[0].mxu0 %vm654_vm2, %v1763_v10  ;;  %1588 = vmatmul.mubr.msk.bf16.vlgmr.msra.gmra.mrb[0].mxu1 %vm654_vm2, %v1764_v11 }
  0x1d   : > { %755 = vmatprep.mubr.bf16.mxu0 %v1809_v0  ;;  %865 = vmatprep.mubr.bf16.mxu1 %v1809_v0 }
  0x1e   : > { %436 = vperm.xlu0 %1760, %v386_v26   ;;  %441 = vperm.xlu1 %1761, %v387_v27  }
  0x22   : > { %526 = vperm.xlu0 %1760, %v404_v28   ;;  %531 = vperm.xlu1 %1761, %v405_v29  }
  0x24   : > { %1578 = vmatmul.mubr.msk.bf16.gmra.mrb[4].mxu0 %vm654_vm2, %v1765_v18  ;;  %1589 = vmatmul.mubr.msk.bf16.gmra.mrb[4].mxu1 %vm654_vm2, %v1766_v19 }
  0x25   : > { %765 = vmatprep.mubr.bf16.mxu0 %v1809_v0  ;;  %875 = vmatprep.mubr.bf16.mxu1 %v1809_v0 }
  0x26   : > { %446 = vperm.xlu0 %1760, %v388_v32   ;;  %451 = vperm.xlu1 %1761, %v389_v33  }
  0x2a   : > { %536 = vperm.xlu0 %1760, %v406_v34   ;;  %541 = vperm.xlu1 %1761, %v407_v35  }
  0x2c   : > { %1579 = vmatmul.mubr.msk.bf16.gmra.mrb[8].mxu0 %vm654_vm2, %v1767_v24  ;;  %1590 = vmatmul.mubr.msk.bf16.gmra.mrb[8].mxu1 %vm654_vm2, %v1768_v25 }
  0x2d   : > { %775 = vmatprep.mubr.bf16.mxu0 %v1809_v0  ;;  %885 = vmatprep.mubr.bf16.mxu1 %v1809_v0 }
  0x2e   : > { %456 = vperm.xlu0 %1760, %v390_v38   ;;  %461 = vperm.xlu1 %1761, %v391_v39  }
  0x32   : > { %546 = vperm.xlu0 %1760, %v408_v40   ;;  %551 = vperm.xlu1 %1761, %v409_v41  }
  0x34   : > { %1580 = vmatmul.mubr.msk.bf16.gmra.mrb[12].mxu0 %vm654_vm2, %v1769_v30  ;;  %1591 = vmatmul.mubr.msk.bf16.gmra.mrb[12].mxu1 %vm654_vm2, %v1770_v31 }
  0x35   : > { %785 = vmatprep.mubr.bf16.mxu0 %v1809_v0  ;;  %895 = vmatprep.mubr.bf16.mxu1 %v1809_v0 }
  0x36   : > { %466 = vperm.xlu0 %1760, %v392_v43   ;;  %471 = vperm.xlu1 %1761, %v393_v44  }
  0x3a   : > { %556 = vperm.xlu0 %1760, %v410_v45   ;;  %561 = vperm.xlu1 %1761, %v411_v46  }
  0x3c   : > { %1581 = vmatmul.mubr.msk.bf16.gmra.mrb[16].mxu0 %vm654_vm2, %v1771_v36  ;;  %1592 = vmatmul.mubr.msk.bf16.gmra.mrb[16].mxu1 %vm654_vm2, %v1772_v37 }
  0x3d   : > { %795 = vmatprep.mubr.bf16.mxu0 %v1809_v0 }
  0x3e   : > { %476 = vperm.xlu0 %1760, %v394_v48   ;;  %481 = vperm.xlu1 %1761, %v395_v49  }
  0x42   : > { %566 = vperm.xlu0 %1760, %v412_v50   ;;  %571 = vperm.xlu1 %1761, %v413_v51  }
  0x44   : > { %1582 = vmatmul.mubr.msk.bf16.gmra.mrb[20].mxu0 %vm654_vm2, %v1773_v42 }
  0x45   : > { %805 = vmatprep.mubr.bf16.mxu0 %v1809_v0 }
  0x46   : > { %486 = vperm.xlu0 %1760, %v396_v53   ;;  %491 = vperm.xlu1 %1761, %v397_v54  }
  0x4c   : > { %1583 = vmatmul.mubr.msk.bf16.gmra.mrb[24].mxu0 %vm654_vm2, %v1774_v47 }
  0x4d   : > { %815 = vmatprep.mubr.bf16.mxu0 %v1809_v0 }
  0x54   : > { %1584 = vmatmul.mubr.msk.bf16.gmra.mrb[28].mxu0 %vm654_vm2, %v1775_v52 }
  0x55   : > { %825 = vmatprep.mubr.bf16.mxu0 %v1809_v0 }
  0x5c   : > { %1585 = vmatmul.mubr.msk.bf16.gmra.mrb[32].mxu0 %vm654_vm2, %v1776_v55 }
  0x5d   : > { %835 = vmatprep.mubr.bf16.mxu0 %v1809_v0 }
  0x64   : > { %1586 = vmatmul.mubr.msk.bf16.gmra.mrb[36].mxu0 %vm654_vm2, %v1777_v56 }
  0x65   : > { %845 = vmatprep.mubr.bf16.mxu0 %v1809_v0 }
  0x6c   : > { %1587 = vmatmul.mubr.msk.bf16.gmra.mrb[40].mxu0 %vm654_vm2, %v1778_v57 }
  0x88   : > { %v2053_v58 = vpop.permute.xlu0 %496  ;;  %v417_v59 = vpop.permute.xlu1 %416 }
  0x8c   : > { %v2055_v60 = vpop.permute.xlu0 %501  ;;  %v422_v61 = vpop.permute.xlu1 %421 }
  0x90   : > { %v2057_v62 = vpop.permute.xlu0 %506  ;;  %v2059_v63 = vpop.permute.xlu1 %511 }
  0x94   : > { %v427_v1 = vpop.permute.xlu0 %426  ;;  %v2061_v2 = vpop.permute.xlu1 %431 }
  0x99   : > { %v2063_v0 = vpop.permute.xlu0 %516  ;;  %v2065_v3 = vpop.permute.xlu1 %521 }
  0x9d   : > { %v2067_v4 = vpop.permute.xlu0 %436  ;;  %v2069_v5 = vpop.permute.xlu1 %441 }
  0xa1   : > { %v527_v6 = vpop.permute.xlu0 %526  ;;  %v532_v7 = vpop.permute.xlu1 %531 }
  0xa5   : > { %v2071_v8 = vpop.permute.xlu0 %446  ;;  %v2073_v9 = vpop.permute.xlu1 %451 }
  0xa9   : > { %v537_v10 = vpop.permute.xlu0 %536  ;;  %v542_v11 = vpop.permute.xlu1 %541 }
  0xad   : > { %v2075_v12 = vpop.permute.xlu0 %456  ;;  %v2077_v13 = vpop.permute.xlu1 %461 }
  0xb1   : > { %v2079_v14 = vpop.permute.xlu0 %546  ;;  %v2081_v15 = vpop.permute.xlu1 %551 }
  0xb5   : > { %v2083_v42 = vpop.permute.xlu0 %466  ;;  %v2085_v43 = vpop.permute.xlu1 %471 }
  0xef   : > { %v747_v16 = vpop.f32.mrb[0].mxu0  ;;  %v857_v17 = vpop.f32.mrb[0].mxu1 }
  0xf0   : > { %v748_v18 = vadd.f32 %v747_v16, %v417_v59  ;;  %v749_v19 = vpop.f32.mrb[1].mxu0  ;;  %v858_v20 = vadd.f32 %v857_v17, %v527_v6  ;;  %v859_v21 = vpop.f32.mrb[1].mxu1 }
  0xf1   : > { %v750_v22 = vadd.f32 %v749_v19, %v417_v59  ;;  %v751_v23 = vpop.f32.mrb[2].mxu0  ;;  %v860_v24 = vadd.f32 %v859_v21, %v527_v6  ;;  %v861_v25 = vpop.f32.mrb[2].mxu1 }
  0xf2   : > { %v906_v26 = vmax.f32 %v748_v18, 0.0  ;;  %v752_v27 = vadd.f32 %v751_v23, %v422_v61  ;;  %v753_v28 = vpop.f32.mrb[3].mxu0  ;;  %v950_v29 = vmax.f32 %v858_v20, 0.0  ;;  %v862_v30 = vadd.f32 %v861_v25, %v532_v7  ;;  %v863_v31 = vpop.f32.mrb[3].mxu1 }
  0xf3   : > { %v907_v32 = vmax.f32 %v750_v22, 0.0  ;;  %v754_v33 = vadd.f32 %v753_v28, %v422_v61  ;;  %v951_v34 = vmax.f32 %v860_v24, 0.0  ;;  %v864_v35 = vadd.f32 %v863_v31, %v532_v7  ;;  %v557_v24 = vpop.permute.xlu0 %556  ;;  %v562_v25 = vpop.permute.xlu1 %561 }
  0xf4   : > { %v908_v36 = vmax.f32 %v752_v27, 0.0  ;;  %v952_v37 = vmax.f32 %v862_v30, 0.0 }
  0xf5   : > { %v909_v38 = vmax.f32 %v754_v33, 0.0  ;;  %v970_v39 = vadd.f32 %v907_v32, %v906_v26  ;;  %v953_v40 = vmax.f32 %v864_v35, 0.0  ;;  %v992_v41 = vadd.f32 %v951_v34, %v950_v29 }
  0xf7   : > { %v757_v44 = vpop.f32.mrb[4].mxu0  ;;  %1133 = vadd.xlane.f32.xlu0 %v970_v39  ;;  %v867_v45 = vpop.f32.mrb[4].mxu1  ;;  %1177 = vadd.xlane.f32.xlu1 %v992_v41  ;;  %v971_v46 = vadd.f32 %v909_v38, %v908_v36  ;;  %v993_v47 = vadd.f32 %v953_v40, %v952_v37 }
  0xf8   : > { %v758_v48 = vadd.f32 %v757_v44, %v427_v1  ;;  %v759_v49 = vpop.f32.mrb[5].mxu0  ;;  %v868_v50 = vadd.f32 %v867_v45, %v537_v10  ;;  %v869_v51 = vpop.f32.mrb[5].mxu1 }
  0xf9   : > { %v760_v52 = vadd.f32 %v759_v49, %v427_v1  ;;  %v761_v53 = vpop.f32.mrb[6].mxu0  ;;  %v870_v54 = vadd.f32 %v869_v51, %v537_v10  ;;  %v871_v55 = vpop.f32.mrb[6].mxu1 }
  0xfa   : > { %v910_v56 = vmax.f32 %v758_v48, 0.0  ;;  %v762_v57 = vadd.f32 %v761_v53, %v2061_v2  ;;  %v763_v59 = vpop.f32.mrb[7].mxu0  ;;  %v954_v61 = vmax.f32 %v868_v50, 0.0  ;;  %v872_v6 = vadd.f32 %v871_v55, %v542_v11  ;;  %v873_v7 = vpop.f32.mrb[7].mxu1 }
  0xfb   : > { %v911_v16 = vmax.f32 %v760_v52, 0.0  ;;  %v764_v17 = vadd.f32 %v763_v59, %v2061_v2  ;;  %1135 = vadd.xlane.f32.xlu0 %v971_v46  ;;  %v955_v18 = vmax.f32 %v870_v54, 0.0  ;;  %v874_v19 = vadd.f32 %v873_v7, %v542_v11  ;;  %v2099_v52 = vpop.permute.xlu0 %476  ;;  %v2101_v53 = vpop.permute.xlu1 %481 }
  0xfc   : > { %v912_v20 = vmax.f32 %v762_v57, 0.0  ;;  %v956_v21 = vmax.f32 %v872_v6, 0.0 }
  0xfd   : > { %v913_v22 = vmax.f32 %v764_v17, 0.0  ;;  %v972_v1 = vadd.f32 %v911_v16, %v910_v56  ;;  %v957_v23 = vmax.f32 %v874_v19, 0.0  ;;  %v994_v10 = vadd.f32 %v955_v18, %v954_v61 }
  0xff   : > { %v767_v26 = vpop.f32.mrb[8].mxu0  ;;  %1137 = vadd.xlane.f32.xlu1 %v972_v1  ;;  %1179 = vadd.xlane.f32.xlu0 %v993_v47  ;;  %v877_v27 = vpop.f32.mrb[8].mxu1  ;;  %v973_v28 = vadd.f32 %v913_v22, %v912_v20  ;;  %v995_v29 = vadd.f32 %v957_v23, %v956_v21 }
 0x100   : > { %v768_v30 = vadd.f32 %v767_v26, %v2067_v4  ;;  %v769_v2 = vpop.f32.mrb[9].mxu0  ;;  %v878_v31 = vadd.f32 %v877_v27, %v2079_v14  ;;  %v879_v11 = vpop.f32.mrb[9].mxu1 }
 0x101   : > { %v770_v32 = vadd.f32 %v769_v2, %v2067_v4  ;;  %v771_v33 = vpop.f32.mrb[10].mxu0  ;;  %v880_v34 = vadd.f32 %v879_v11, %v2079_v14  ;;  %v881_v35 = vpop.f32.mrb[10].mxu1 }
 0x102   : > { %v914_v36 = vmax.f32 %v768_v30, 0.0  ;;  %v772_v37 = vadd.f32 %v771_v33, %v2069_v5  ;;  %v773_v38 = vpop.f32.mrb[11].mxu0  ;;  %v958_v39 = vmax.f32 %v878_v31, 0.0  ;;  %v882_v40 = vadd.f32 %v881_v35, %v2081_v15  ;;  %v883_v41 = vpop.f32.mrb[11].mxu1 }
 0x103   : > { %v915_v44 = vmax.f32 %v770_v32, 0.0  ;;  %v774_v45 = vadd.f32 %v773_v38, %v2069_v5  ;;  %1181 = vadd.xlane.f32.xlu1 %v994_v10  ;;  %1139 = vadd.xlane.f32.xlu0 %v973_v28  ;;  %v959_v46 = vmax.f32 %v880_v34, 0.0  ;;  %v884_v4 = vadd.f32 %v883_v41, %v2081_v15  ;;  %v567_v31 = vpop.permute.xlu0 %566  ;;  %v572_v11 = vpop.permute.xlu1 %571 }
 0x104   : > { %v916_v47 = vmax.f32 %v772_v37, 0.0  ;;  %v960_v48 = vmax.f32 %v882_v40, 0.0 }
 0x105   : > { %v917_v14 = vmax.f32 %v774_v45, 0.0  ;;  %v961_v49 = vmax.f32 %v884_v4, 0.0  ;;  %v974_v50 = vadd.f32 %v915_v44, %v914_v36  ;;  %v2097_v51 = vadd.f32 %v959_v46, %v958_v39 }
 0x107   : > { %v777_v54 = vpop.f32.mrb[12].mxu0  ;;  %v887_v55 = vpop.f32.mrb[12].mxu1  ;;  %1141 = vadd.xlane.f32.xlu1 %v974_v50  ;;  %1183 = vadd.xlane.f32.xlu0 %v995_v29  ;;  %v975_v5 = vadd.f32 %v917_v14, %v916_v47  ;;  %v2103_v56 = vadd.f32 %v961_v49, %v960_v48 }
 0x108   : > { %v778_v15 = vadd.f32 %v777_v54, %v2071_v8  ;;  %v888_v57 = vadd.f32 %v887_v55, %v557_v24  ;;  %v779_v59 = vpop.f32.mrb[13].mxu0  ;;  %v889_v61 = vpop.f32.mrb[13].mxu1 }
 0x109   : > { %v780_v6 = vadd.f32 %v779_v59, %v2071_v8  ;;  %v890_v7 = vadd.f32 %v889_v61, %v557_v24  ;;  %v781_v16 = vpop.f32.mrb[14].mxu0  ;;  %v891_v17 = vpop.f32.mrb[14].mxu1 }
 0x10a   : > { %v918_v18 = vmax.f32 %v778_v15, 0.0  ;;  %v962_v19 = vmax.f32 %v888_v57, 0.0  ;;  %v782_v20 = vadd.f32 %v781_v16, %v2073_v9  ;;  %v892_v21 = vadd.f32 %v891_v17, %v562_v25  ;;  %v783_v22 = vpop.f32.mrb[15].mxu0  ;;  %v893_v1 = vpop.f32.mrb[15].mxu1 }
 0x10b   : > { %v919_v23 = vmax.f32 %v780_v6, 0.0  ;;  %v963_v10 = vmax.f32 %v890_v7, 0.0  ;;  %v784_v26 = vadd.f32 %v783_v22, %v2073_v9  ;;  %v894_v27 = vadd.f32 %v893_v1, %v562_v25  ;;  %1143 = vadd.xlane.f32.xlu0 %v975_v5 }
 0x10c   : > { %v920_v28 = vmax.f32 %v782_v20, 0.0  ;;  %v964_v29 = vmax.f32 %v892_v21, 0.0 }
 0x10d   : > { %v921_v30 = vmax.f32 %v784_v26, 0.0  ;;  %v965_v8 = vmax.f32 %v894_v27, 0.0  ;;  %v976_v24 = vadd.f32 %v919_v23, %v918_v18  ;;  %v2109_v2 = vadd.f32 %v963_v10, %v962_v19 }
 0x10f   : > { %v787_v32 = vpop.f32.mrb[16].mxu0  ;;  %v897_v33 = vpop.f32.mrb[16].mxu1  ;;  %1145 = vadd.xlane.f32.xlu1 %v976_v24  ;;  %v977_v34 = vadd.f32 %v921_v30, %v920_v28  ;;  %v2111_v35 = vadd.f32 %v965_v8, %v964_v29 }
 0x110   : > { %v788_v36 = vadd.f32 %v787_v32, %v2075_v12  ;;  %v898_v9 = vadd.f32 %v897_v33, %v567_v31  ;;  %v789_v25 = vpop.f32.mrb[17].mxu0  ;;  %v899_v37 = vpop.f32.mrb[17].mxu1 }
 0x111   : > { %v790_v38 = vadd.f32 %v789_v25, %v2075_v12  ;;  %v900_v39 = vadd.f32 %v899_v37, %v567_v31  ;;  %v791_v40 = vpop.f32.mrb[18].mxu0  ;;  %v901_v41 = vpop.f32.mrb[18].mxu1  ;;  %1147 = vadd.xlane.f32.xlu0 %v977_v34 }
 0x112   : > { %v922_v44 = vmax.f32 %v788_v36, 0.0  ;;  %v966_v45 = vmax.f32 %v898_v9, 0.0  ;;  %v792_v46 = vadd.f32 %v791_v40, %v2077_v13  ;;  %v902_v4 = vadd.f32 %v901_v41, %v572_v11  ;;  %v793_v47 = vpop.f32.mrb[19].mxu0  ;;  %v903_v48 = vpop.f32.mrb[19].mxu1 }
 0x113   : > { %v923_v14 = vmax.f32 %v790_v38, 0.0  ;;  %v967_v49 = vmax.f32 %v900_v39, 0.0  ;;  %v794_v50 = vadd.f32 %v793_v47, %v2077_v13  ;;  %v904_v54 = vadd.f32 %v903_v48, %v572_v11  ;;  %v487_v9 = vpop.permute.xlu0 %486  ;;  %v492_v40 = vpop.permute.xlu1 %491 }
 0x114   : > { %v924_v55 = vmax.f32 %v792_v46, 0.0  ;;  %v968_v5 = vmax.f32 %v902_v4, 0.0 }
 0x115   : > { %v925_v15 = vmax.f32 %v794_v50, 0.0  ;;  %v969_v12 = vmax.f32 %v904_v54, 0.0  ;;  %v978_v57 = vadd.f32 %v923_v14, %v922_v44  ;;  %v2117_v59 = vadd.f32 %v967_v49, %v966_v45 }
 0x117   : > { %v797_v61 = vpop.f32.mrb[20].mxu0  ;;  %1149 = vadd.xlane.f32.xlu1 %v978_v57  ;;  %v979_v6 = vadd.f32 %v925_v15, %v924_v55  ;;  %v2119_v7 = vadd.f32 %v969_v12, %v968_v5 }
 0x118   : > { %v798_v16 = vadd.f32 %v797_v61, %v2083_v42  ;;  %v799_v17 = vpop.f32.mrb[21].mxu0 }
 0x119   : > { %v800_v18 = vadd.f32 %v799_v17, %v2083_v42  ;;  %v801_v19 = vpop.f32.mrb[22].mxu0  ;;  %1151 = vadd.xlane.f32.xlu0 %v979_v6 }
 0x11a   : > { %v926_v13 = vmax.f32 %v798_v16, 0.0  ;;  %v802_v20 = vadd.f32 %v801_v19, %v2085_v43  ;;  %v803_v21 = vpop.f32.mrb[23].mxu0 }
 0x11b   : > { %v927_v22 = vmax.f32 %v800_v18, 0.0  ;;  %v804_v1 = vadd.f32 %v803_v21, %v2085_v43 }
 0x11c   : > { %v928_v23 = vmax.f32 %v802_v20, 0.0 }
 0x11d   : > { %v929_v10 = vmax.f32 %v804_v1, 0.0  ;;  %v2125_v26 = vadd.f32 %v927_v22, %v926_v13 }
 0x11f   : > { %v807_v27 = vpop.f32.mrb[24].mxu0  ;;  %v2127_v28 = vadd.f32 %v929_v10, %v928_v23 }
 0x120   : > { %v808_v29 = vadd.f32 %v807_v27, %v2099_v52  ;;  %v809_v30 = vpop.f32.mrb[25].mxu0 }
 0x121   : > { %v810_v42 = vadd.f32 %v809_v30, %v2099_v52  ;;  %v811_v8 = vpop.f32.mrb[26].mxu0 }
 0x122   : > { %v930_v24 = vmax.f32 %v808_v29, 0.0  ;;  %v812_v31 = vadd.f32 %v811_v8, %v2101_v53  ;;  %v813_v11 = vpop.f32.mrb[27].mxu0 }
 0x123   : > { %v931_v32 = vmax.f32 %v810_v42, 0.0  ;;  %v814_v43 = vadd.f32 %v813_v11, %v2101_v53 }
 0x124   : > { %v932_v33 = vmax.f32 %v812_v31, 0.0 }
 0x125   : > { %v933_v34 = vmax.f32 %v814_v43, 0.0  ;;  %v2133_v36 = vadd.f32 %v931_v32, %v930_v24 }
 0x127   : > { %v817_v25 = vpop.f32.mrb[28].mxu0  ;;  %v2135_v37 = vadd.f32 %v933_v34, %v932_v33 }
 0x128   : > { %v818_v38 = vadd.f32 %v817_v25, %v487_v9  ;;  %v819_v39 = vpop.f32.mrb[29].mxu0 }
 0x129   : > { %v820_v52 = vadd.f32 %v819_v39, %v487_v9  ;;  %v821_v41 = vpop.f32.mrb[30].mxu0 }
 0x12a   : > { %v934_v44 = vmax.f32 %v818_v38, 0.0  ;;  %v822_v45 = vadd.f32 %v821_v41, %v492_v40  ;;  %v823_v46 = vpop.f32.mrb[31].mxu0 }
 0x12b   : > { %v935_v4 = vmax.f32 %v820_v52, 0.0  ;;  %v824_v47 = vadd.f32 %v823_v46, %v492_v40 }
 0x12c   : > { %v936_v48 = vmax.f32 %v822_v45, 0.0 }
 0x12d   : > { %v937_v53 = vmax.f32 %v824_v47, 0.0  ;;  %v984_v14 = vadd.f32 %v935_v4, %v934_v44 }
 0x12f   : > { %v827_v49 = vpop.f32.mrb[32].mxu0  ;;  %v985_v50 = vadd.f32 %v937_v53, %v936_v48 }
 0x130   : > { %v828_v54 = vadd.f32 %v827_v49, %v2053_v58  ;;  %v829_v55 = vpop.f32.mrb[33].mxu0 }
 0x131   : > { %v830_v5 = vadd.f32 %v829_v55, %v2053_v58  ;;  %v831_v15 = vpop.f32.mrb[34].mxu0 }
 0x132   : > { %v938_v12 = vmax.f32 %v828_v54, 0.0  ;;  %v832_v57 = vadd.f32 %v831_v15, %v2055_v60  ;;  %v833_v61 = vpop.f32.mrb[35].mxu0 }
 0x133   : > { %v939_v6 = vmax.f32 %v830_v5, 0.0  ;;  %v834_v16 = vadd.f32 %v833_v61, %v2055_v60 }
 0x134   : > { %v940_v17 = vmax.f32 %v832_v57, 0.0 }
 0x135   : > { %v941_v18 = vmax.f32 %v834_v16, 0.0  ;;  %v986_v19 = vadd.f32 %v939_v6, %v938_v12 }
 0x137   : > { %v837_v13 = vpop.f32.mrb[36].mxu0  ;;  %1165 = vadd.xlane.f32.xlu0 %v986_v19  ;;  %v987_v20 = vadd.f32 %v941_v18, %v940_v17 }
 0x138   : > { %v838_v21 = vadd.f32 %v837_v13, %v2057_v62  ;;  %v839_v22 = vpop.f32.mrb[37].mxu0 }
 0x139   : > { %v840_v1 = vadd.f32 %v839_v22, %v2057_v62  ;;  %v841_v58 = vpop.f32.mrb[38].mxu0  ;;  %1167 = vadd.xlane.f32.xlu1 %v987_v20 }
 0x13a   : > { %v942_v23 = vmax.f32 %v838_v21, 0.0  ;;  %v842_v10 = vadd.f32 %v841_v58, %v2059_v63  ;;  %v843_v27 = vpop.f32.mrb[39].mxu0 }
 0x13b   : > { %v943_v29 = vmax.f32 %v840_v1, 0.0  ;;  %v844_v60 = vadd.f32 %v843_v27, %v2059_v63 }
 0x13c   : > { %v944_v30 = vmax.f32 %v842_v10, 0.0 }
 0x13d   : > { %v945_v42 = vmax.f32 %v844_v60, 0.0  ;;  %v988_v8 = vadd.f32 %v943_v29, %v942_v23 }
 0x13f   : > { %v847_v24 = vpop.f32.mrb[40].mxu0  ;;  %1169 = vadd.xlane.f32.xlu1 %v988_v8  ;;  %v989_v31 = vadd.f32 %v945_v42, %v944_v30 }
 0x140   : > { %v848_v11 = vadd.f32 %v847_v24, %v2063_v0  ;;  %v849_v32 = vpop.f32.mrb[41].mxu0 }
 0x141   : > { %v850_v62 = vadd.f32 %v849_v32, %v2063_v0  ;;  %v851_v43 = vpop.f32.mrb[42].mxu0  ;;  %1171 = vadd.xlane.f32.xlu0 %v989_v31  ;;  %v1230_v0 = vld [vmem:[%s2267_s3 + $0x8] sm:$0xff] }
 0x142   : > { %v946_v33 = vmax.f32 %v848_v11, 0.0  ;;  %v852_v34 = vadd.f32 %v851_v43, %v2065_v3  ;;  %v853_v9 = vpop.f32.mrb[43].mxu0  ;;  %1317 = vmatprep.mubr.f32.mxu1 %v1230_v0 }
 0x143   : > { %v947_v25 = vmax.f32 %v850_v62, 0.0  ;;  %v854_v63 = vadd.f32 %v853_v9, %v2065_v3 }
 0x144   : > { %v948_v38 = vmax.f32 %v852_v34, 0.0 }
 0x145   : > { %v949_v39 = vmax.f32 %v854_v63, 0.0  ;;  %v990_v40 = vadd.f32 %v947_v25, %v946_v33 }
 0x147   : > { %1173 = vadd.xlane.f32.xlu1 %v990_v40  ;;  %v991_v52 = vadd.f32 %v949_v39, %v948_v38 }
 0x149   : > { %1175 = vadd.xlane.f32.xlu0 %v991_v52 }
 0x14b   : > { %1185 = vadd.xlane.f32.xlu1 %v2097_v51 }
 0x14d   : > { %1187 = vadd.xlane.f32.xlu0 %v2103_v56 }
 0x14f   : > { %1153 = vadd.xlane.f32.xlu1 %v2125_v26 }
 0x151   : > { %1155 = vadd.xlane.f32.xlu0 %v2127_v28 }
 0x153   : > { %1189 = vadd.xlane.f32.xlu1 %v2109_v2 }
 0x155   : > { %1191 = vadd.xlane.f32.xlu0 %v2111_v35 }
 0x157   : > { %1157 = vadd.xlane.f32.xlu1 %v2133_v36 }
 0x159   : > { %1159 = vadd.xlane.f32.xlu0 %v2135_v37 }
 0x15b   : > { %1193 = vadd.xlane.f32.xlu1 %v2117_v59 }
 0x15d   : > { %1195 = vadd.xlane.f32.xlu0 %v2119_v7 }
 0x15f   : > { %1161 = vadd.xlane.f32.xlu1 %v984_v14 }
 0x161   : > { %1163 = vadd.xlane.f32.xlu0 %v985_v50 }
 0x184   : > { %v1134_v3 = vpop.xlane.xlu0 %1133  ;;  %v1178_v2 = vpop.xlane.xlu1 %1177 }
 0x185   : > { %v1197_v14 = vmul.f32 0.00390625, %v1134_v3  ;;  %v1219_v19 = vmul.f32 0.00390625, %v1178_v2 }
 0x188   : > { %v1136_v51 = vpop.xlane.xlu0 %1135 }
 0x189   : > { %v1198_v4 = vmul.f32 0.00390625, %v1136_v51 }
 0x18b   : > { %v1686_v50 = vpack.c.bf16 %v1198_v4, %v1197_v14  ;;  %v1234_v14 = vld [vmem:[%s2267_s3 + $0x28] sm:$0xff] }
 0x18c   : > { %v1180_v56 = vpop.xlane.xlu0 %1179  ;;  %v1138_v26 = vpop.xlane.xlu1 %1137 }
 0x18d   : > { %v1199_v57 = vmul.f32 0.00390625, %v1138_v26  ;;  %v1220_v13 = vmul.f32 0.00390625, %v1180_v56 }
 0x18f   : > { %v1696_v29 = vpack.c.bf16 %v1220_v13, %v1219_v19 }
 0x190   : > { %v1140_v35 = vpop.xlane.xlu0 %1139  ;;  %v1182_v36 = vpop.xlane.xlu1 %1181 }
 0x191   : > { %v1200_v55 = vmul.f32 0.00390625, %v1140_v35  ;;  %v1221_v60 = vmul.f32 0.00390625, %v1182_v36 }
 0x193   : > { %v1690_v6 = vpack.c.bf16 %v1200_v55, %v1199_v57  ;;  %v1238_v55 = vld [vmem:[%s2267_s3 + $0x48] sm:$0xff] }
 0x194   : > { %v1184_v28 = vpop.xlane.xlu0 %1183  ;;  %v1142_v41 = vpop.xlane.xlu1 %1141  ;;  %v1242_v57 = vld [vmem:[%s2267_s3 + $0x68] sm:$0xff] }
 0x195   : > { %v1201_v22 = vmul.f32 0.00390625, %v1142_v41  ;;  %v1222_v30 = vmul.f32 0.00390625, %v1184_v28 }
 0x197   : > { %v1700_v32 = vpack.c.bf16 %v1222_v30, %v1221_v60 }
 0x198   : > { %v1144_v37 = vpop.xlane.xlu0 %1143 }
 0x199   : > { %v1202_v17 = vmul.f32 0.00390625, %v1144_v37 }
 0x19b   : > { %v1694_v23 = vpack.c.bf16 %v1202_v17, %v1201_v22  ;;  %v1366_v17 = vld [vmem:[%s2269_s5] sm:$0xff]  ;;  %v1246_v22 = vld [vmem:[%s2268_s4 + $0x8] sm:$0xff] }
 0x19c   : > { %v1146_v44 = vpop.xlane.xlu1 %1145 }
 0x19d   : > { %v1203_v42 = vmul.f32 0.00390625, %v1146_v44 }
 0x19e   : > { %v1148_v59 = vpop.xlane.xlu0 %1147 }
 0x19f   : > { %v1204_v10 = vmul.f32 0.00390625, %v1148_v59 }
 0x1a1   : > { %v1698_v24 = vpack.c.bf16 %v1204_v10, %v1203_v42 }
 0x1a4   : > { %v1150_v45 = vpop.xlane.xlu1 %1149 }
 0x1a5   : > { %v1205_v43 = vmul.f32 0.00390625, %v1150_v45 }
 0x1a6   : > { %v1152_v7 = vpop.xlane.xlu0 %1151 }
 0x1a7   : > { %v1206_v31 = vmul.f32 0.00390625, %v1152_v7 }
 0x1a9   : > { %v1702_v9 = vpack.c.bf16 %v1206_v31, %v1205_v43 }
 0x1c4   : > { %v1166_v46 = vpop.xlane.xlu0 %1165 }
 0x1c5   : > { %v1213_v48 = vmul.f32 0.00390625, %v1166_v46 }
 0x1c6   : > { %v1168_v47 = vpop.xlane.xlu1 %1167 }
 0x1c7   : > { %v1214_v53 = vmul.f32 0.00390625, %v1168_v47  ;;  %v1229_v47 = vld [vmem:[%s2267_s3] sm:$0xff] }
 0x1c9   : > { %v1684_v49 = vpack.c.bf16 %v1214_v53, %v1213_v48  ;;  %v1232_v48 = vld [vmem:[%s2267_s3 + $0x18] sm:$0xff]  ;;  %v1231_v53 = vld [vmem:[%s2267_s3 + $0x10] sm:$0xff] }
 0x1cb   : > { %1685 = vmatprep.subr.bf16.mxu1 %v1684_v49  ;;  %v1233_v49 = vld [vmem:[%s2267_s3 + $0x20] sm:$0xff] }
 0x1cc   : > { %v1170_v54 = vpop.xlane.xlu1 %1169  ;;  %1687 = vmatpush3.bf16.msra.mxu1 %v1686_v50  ;;  %v1236_v50 = vld [vmem:[%s2267_s3 + $0x38] sm:$0xff] }
 0x1cd   : > { %v1215_v15 = vmul.f32 0.00390625, %v1170_v54  ;;  %v1235_v54 = vld [vmem:[%s2267_s3 + $0x30] sm:$0xff] }
 0x1ce   : > { %v1172_v5 = vpop.xlane.xlu0 %1171 }
 0x1cf   : > { %v1216_v12 = vmul.f32 0.00390625, %v1172_v5  ;;  %v1237_v5 = vld [vmem:[%s2267_s3 + $0x40] sm:$0xff] }
 0x1d1   : > { %v1688_v61 = vpack.c.bf16 %v1216_v12, %v1215_v15  ;;  %v1240_v15 = vld [vmem:[%s2267_s3 + $0x58] sm:$0xff]  ;;  %v1239_v12 = vld [vmem:[%s2267_s3 + $0x50] sm:$0xff] }
 0x1d3   : > { %1689 = vmatprep.subr.bf16.mxu1 %v1688_v61  ;;  %v1241_v61 = vld [vmem:[%s2267_s3 + $0x60] sm:$0xff] }
 0x1d4   : > { %v1174_v16 = vpop.xlane.xlu1 %1173  ;;  %1691 = vmatpush3.bf16.msra.mxu1 %v1690_v6  ;;  %v1244_v6 = vld [vmem:[%s2267_s3 + $0x78] sm:$0xff] }
 0x1d5   : > { %v1217_v20 = vmul.f32 0.00390625, %v1174_v16  ;;  %v1243_v16 = vld [vmem:[%s2267_s3 + $0x70] sm:$0xff] }
 0x1d6   : > { %v1176_v18 = vpop.xlane.xlu0 %1175 }
 0x1d7   : > { %v1218_v21 = vmul.f32 0.00390625, %v1176_v18 }
 0x1d8   : > { %v1186_v1 = vpop.xlane.xlu1 %1185 }
 0x1d9   : > { %v1692_v58 = vpack.c.bf16 %v1218_v21, %v1217_v20  ;;  %v1223_v34 = vmul.f32 0.00390625, %v1186_v1  ;;  %v1245_v20 = vld [vmem:[%s2268_s4] sm:$0xff] }
 0x1da   : > { %v1188_v27 = vpop.xlane.xlu0 %1187 }
 0x1db   : > { %1693 = vmatprep.subr.bf16.mxu1 %v1692_v58  ;;  %v1224_v62 = vmul.f32 0.00390625, %v1188_v27 }
 0x1dc   : > { %v1154_v8 = vpop.xlane.xlu1 %1153  ;;  %1695 = vmatpush3.bf16.msra.mxu1 %v1694_v23 }
 0x1dd   : > { %1697 = vmatprep.subr.bf16.mxu1 %v1696_v29  ;;  %v1704_v38 = vpack.c.bf16 %v1224_v62, %v1223_v34  ;;  %v1207_v40 = vmul.f32 0.00390625, %v1154_v8  ;;  %v1247_v8 = vld [vmem:[%s2268_s4 + $0x10] sm:$0xff] }
 0x1de   : > { %v1156_v11 = vpop.xlane.xlu0 %1155 }
 0x1df   : > { %v1208_v25 = vmul.f32 0.00390625, %v1156_v11  ;;  %v1248_v11 = vld [vmem:[%s2268_s4 + $0x18] sm:$0xff] }
 0x1e0   : > { %v1190_v33 = vpop.xlane.xlu1 %1189  ;;  %1699 = vmatpush3.bf16.msra.mxu1 %v1698_v24 }
 0x1e1   : > { %1701 = vmatprep.subr.bf16.mxu1 %v1700_v32  ;;  %v1225_v0 = vmul.f32 0.00390625, %v1190_v33  ;;  %v1706_v3 = vpack.c.bf16 %v1208_v25, %v1207_v40 }
 0x1e2   : > { %v1192_v63 = vpop.xlane.xlu0 %1191 }
 0x1e3   : > { %v1226_v39 = vmul.f32 0.00390625, %v1192_v63 }
 0x1e4   : > { %v1158_v52 = vpop.xlane.xlu1 %1157  ;;  %1703 = vmatpush3.bf16.msra.mxu1 %v1702_v9 }
 0x1e5   : > { %1705 = vmatprep.subr.bf16.mxu1 %v1704_v38  ;;  %v1708_v56 = vpack.c.bf16 %v1226_v39, %v1225_v0  ;;  %v1209_v2 = vmul.f32 0.00390625, %v1158_v52  ;;  %v1249_v39 = vld [vmem:[%s2268_s4 + $0x20] sm:$0xff]  ;;  %v1250_v0 = vld [vmem:[%s2268_s4 + $0x28] sm:$0xff] }
 0x1e6   : > { %v1160_v51 = vpop.xlane.xlu0 %1159 }
 0x1e7   : > { %v1210_v35 = vmul.f32 0.00390625, %v1160_v51 }
 0x1e8   : > { %v1194_v26 = vpop.xlane.xlu1 %1193  ;;  %1707 = vmatpush3.bf16.msra.mxu1 %v1706_v3 }
 0x1e9   : > { %v1710_v28 = vpack.c.bf16 %v1210_v35, %v1209_v2  ;;  %1709 = vmatprep.subr.bf16.mxu1 %v1708_v56  ;;  %v1227_v37 = vmul.f32 0.00390625, %v1194_v26 }
 0x1ea   : > { %v1196_v36 = vpop.xlane.xlu0 %1195 }
 0x1eb   : > { %v1228_v41 = vmul.f32 0.00390625, %v1196_v36 }
 0x1ec   : > { %v1162_v59 = vpop.xlane.xlu1 %1161  ;;  %1711 = vmatpush3.bf16.msra.mxu1 %v1710_v28 }
 0x1ed   : > { %v1712_v44 = vpack.c.bf16 %v1228_v41, %v1227_v37  ;;  %v1211_v45 = vmul.f32 0.00390625, %v1162_v59  ;;  %v1251_v41 = vld [vmem:[%s2268_s4 + $0x30] sm:$0xff] }
 0x1ee   : > { %v1164_v7 = vpop.xlane.xlu0 %1163 }
 0x1ef   : > { %v1212_v46 = vmul.f32 0.00390625, %v1164_v7  ;;  %1713 = vmatprep.subr.bf16.mxu1 %v1712_v44  ;;  %v1252_v7 = vld [vmem:[%s2268_s4 + $0x38] sm:$0xff] }
 0x1f1   : > { %v1714_v4 = vpack.c.bf16 %v1212_v46, %v1211_v45 }
 0x1f3   : > { %1715 = vmatpush3.bf16.msra.mxu1 %v1714_v4 }
 0x1f6   : > { %1318 = vmatmul.mubr.f32.vlgmr.msra.gmra.mrb[20].mxu1 %v1229_v47 }
 0x1f7   : > { %1322 = vmatprep.mubr.f32.mxu1 %v1232_v48 }
 0x1fa   : > { %1323 = vmatmul.mubr.f32.gmra.mrb[22].mxu1 %v1231_v53 }
 0x1fb   : > { %1327 = vmatprep.mubr.f32.mxu1 %v1234_v14 }
 0x1fe   : > { %1328 = vmatmul.mubr.f32.gmra.mrb[24].mxu1 %v1233_v49  ;;  %v1367_v49 = vld [vmem:[%s2269_s5 + $0x8] sm:$0x3] }
 0x1ff   : > { %1332 = vmatprep.mubr.f32.mxu1 %v1236_v50  ;;  %v1369_v50 = vld [vmem:[%s2270_s6 + $0x8] sm:$0x3] }
 0x202   : > { %1333 = vmatmul.mubr.f32.gmra.mrb[26].mxu1 %v1235_v54  ;;  %v1368_v54 = vld [vmem:[%s2270_s6] sm:$0xff] }
 0x203   : > { %1337 = vmatprep.mubr.f32.mxu1 %v1238_v55 }
 0x206   : > { %1338 = vmatmul.mubr.f32.gmra.mrb[28].mxu1 %v1237_v5 }
 0x207   : > { %1342 = vmatprep.mubr.f32.mxu1 %v1240_v15 }
 0x20a   : > { %1343 = vmatmul.mubr.f32.gmra.mrb[30].mxu1 %v1239_v12 }
 0x20b   : > { %1347 = vmatprep.mubr.f32.mxu1 %v1242_v57 }
 0x20e   : > { %1348 = vmatmul.mubr.f32.gmra.mrb[32].mxu1 %v1241_v61 }
 0x20f   : > { %1352 = vmatprep.mubr.f32.mxu1 %v1244_v6 }
 0x212   : > { %1353 = vmatmul.mubr.f32.gmra.mrb[34].mxu1 %v1243_v16 }
 0x213   : > { %1681 = vmatprep.mubr.msk.f32.mxu1 %vm1370_vm3, %v1366_v17 }
 0x2c9   : > { %v1631_v18 = vpop.f32.mrb[20].mxu1 }
 0x2ca   : > { %v1632_v19 = vpop.f32.mrb[21].mxu1 }
 0x2cb   : > { %v1633_v13 = vadd.f32 %v1632_v19, %v1631_v18 }
 0x2cd   : > { %v1634_v21 = vpop.f32.mrb[22].mxu1  ;;  %v1320_v58 = vadd.f32 %v1633_v13, %v1245_v20 }
 0x2ce   : > { %v1635_v1 = vpop.f32.mrb[23].mxu1 }
 0x2cf   : > { %v1636_v23 = vadd.f32 %v1635_v1, %v1634_v21  ;;  %v1358_v60 = vmax.f32 %v1320_v58, 0.0 }
 0x2d1   : > { %v1325_v10 = vadd.f32 %v1636_v23, %v1246_v22  ;;  %v1637_v27 = vpop.f32.mrb[24].mxu1 }
 0x2d2   : > { %v1638_v29 = vpop.f32.mrb[25].mxu1 }
 0x2d3   : > { %v1359_v30 = vmax.f32 %v1325_v10, 0.0  ;;  %v1639_v42 = vadd.f32 %v1638_v29, %v1637_v27 }
 0x2d5   : > { %v1640_v24 = vpop.f32.mrb[26].mxu1  ;;  %v1716_v31 = vpack.c.bf16 %v1359_v30, %v1358_v60  ;;  %v1330_v62 = vadd.f32 %v1639_v42, %v1247_v8 }
 0x2d6   : > { %v1641_v32 = vpop.f32.mrb[27].mxu1 }
 0x2d7   : > { %v1642_v43 = vadd.f32 %v1641_v32, %v1640_v24  ;;  %1717 = vmatprep.subr.bf16.mxu1 %v1716_v31  ;;  %v1360_v25 = vmax.f32 %v1330_v62, 0.0 }
 0x2d8   : > { %1719 = vmatpush3.bf16.msra.mxu1 %v1716_v31 }
 0x2d9   : > { %v1335_v33 = vadd.f32 %v1642_v43, %v1248_v11  ;;  %v1643_v34 = vpop.f32.mrb[28].mxu1 }
 0x2da   : > { %v1644_v9 = vpop.f32.mrb[29].mxu1 }
 0x2db   : > { %v1361_v63 = vmax.f32 %v1335_v33, 0.0  ;;  %v1645_v38 = vadd.f32 %v1644_v9, %v1643_v34 }
 0x2dd   : > { %v1646_v40 = vpop.f32.mrb[30].mxu1  ;;  %v1720_v52 = vpack.c.bf16 %v1361_v63, %v1360_v25  ;;  %v1340_v51 = vadd.f32 %v1645_v38, %v1249_v39 }
 0x2de   : > { %v1647_v3 = vpop.f32.mrb[31].mxu1 }
 0x2df   : > { %v1648_v56 = vadd.f32 %v1647_v3, %v1646_v40  ;;  %1721 = vmatprep.subr.bf16.mxu1 %v1720_v52  ;;  %v1362_v28 = vmax.f32 %v1340_v51, 0.0 }
 0x2e0   : > { %1723 = vmatpush3.bf16.msra.mxu1 %v1720_v52 }
 0x2e1   : > { %v1345_v2 = vadd.f32 %v1648_v56, %v1250_v0  ;;  %v1649_v35 = vpop.f32.mrb[32].mxu1 }
 0x2e2   : > { %v1650_v26 = vpop.f32.mrb[33].mxu1 }
 0x2e3   : > { %v1363_v36 = vmax.f32 %v1345_v2, 0.0  ;;  %v1651_v37 = vadd.f32 %v1650_v26, %v1649_v35 }
 0x2e5   : > { %v1652_v59 = vpop.f32.mrb[34].mxu1  ;;  %v1724_v44 = vpack.c.bf16 %v1363_v36, %v1362_v28  ;;  %v1350_v46 = vadd.f32 %v1651_v37, %v1251_v41 }
 0x2e6   : > { %v1653_v45 = vpop.f32.mrb[35].mxu1 }
 0x2e7   : > { %v1654_v4 = vadd.f32 %v1653_v45, %v1652_v59  ;;  %1725 = vmatprep.subr.bf16.mxu1 %v1724_v44  ;;  %v1364_v48 = vmax.f32 %v1350_v46, 0.0 }
 0x2e8   : > { %1727 = vmatpush3.bf16.msra.mxu1 %v1724_v44 }
 0x2e9   : > { %v1355_v47 = vadd.f32 %v1654_v4, %v1252_v7 }
 0x2eb   : > { %v1365_v53 = vmax.f32 %v1355_v47, 0.0 }
 0x2ed   : > { %v1728_v14 = vpack.c.bf16 %v1365_v53, %v1364_v48 }
 0x2ef   : > { %1729 = vmatprep.subr.bf16.mxu1 %v1728_v14 }
 0x2f0   : > { %1731 = vmatpush3.bf16.msra.mxu1 %v1728_v14 }
 0x2f3   : > { %1682 = vmatmul.mubr.msk.f32.vlgmr.msra.gmra.mrb[36].mxu1 %vm1370_vm3, %v1367_v49 }
 0x3c6   : > { %v1683_v55 = vpop.f32.mrb[36].mxu1 }
 0x3c7   : > { %v1449_v5 = vadd.f32 %v1683_v55, %v1369_v50  ;;  %v1443_v15 = vpop.f32.mrb[37].mxu1 }
 0x3c8   : > { %v1444_v12 = vadd.f32 %v1443_v15, %v1368_v54 }
 0x3c9   : > { %v1455_v57 = vsel %vm1454_vm4, %v1449_v5, -inf }
 0x3ca   : > { %v1453_v61 = vsel %vm1452_vm5, %v1444_v12, -inf }
 0x3cb   : > { %v1456_v6 = vmax.f32 %v1453_v61, %v1455_v57 }
 0x3cd   : > { %v1457_v16 = vrot.slane %v1456_v6, 4 }
 0x3cf   : > { %v1458_v17 = vmax.f32 %v1456_v6, %v1457_v16 }
 0x3d1   : > { %v1459_v18 = vrot.slane %v1458_v17, 2 }
 0x3d3   : > { %v1460_v19 = vmax.f32 %v1458_v17, %v1459_v18 }
 0x3d5   : > { %v1461_v13 = vrot.slane %v1460_v19, 1 }
 0x3d7   : > { %v1462_v20 = vmax.f32 %v1460_v19, %v1461_v13 }
 0x3d9   : > { %v1463_v21 = vsub.f32 %v1444_v12, %v1462_v20  ;;  %v1464_v22 = vsub.f32 %v1449_v5, %v1462_v20 }
 0x3db   : > { %v1465_v1 = vmul.f32 1.442695, %v1463_v21  ;;  %v1467_v58 = vmul.f32 1.442695, %v1464_v22 }
 0x3dd   : > { %1779 = vpow2.f32 %v1465_v1 }
 0x3de   : > { %1781 = vpow2.f32 %v1467_v58 }
 0x3e7   : > { %v1780_v23 = vpop.eup %1779 }
 0x3e8   : > { %v1782_v10 = vpop.eup %1781  ;;  %v1469_v27 = vsel %vm1452_vm5, %v1780_v23, 0.0 }
 0x3e9   : > { %v1470_v29 = vsel %vm1454_vm4, %v1782_v10, 0.0 }
 0x3ea   : > { %v1471_v60 = vadd.f32 %v1470_v29, %v1469_v27 }
 0x3ec   : > { %v1472_v30 = vrot.slane %v1471_v60, 4 }
 0x3ee   : > { %v1473_v42 = vadd.f32 %v1472_v30, %v1471_v60 }
 0x3f0   : > { %v1474_v8 = vrot.slane %v1473_v42, 2 }
 0x3f2   : > { %v1475_v24 = vadd.f32 %v1474_v8, %v1473_v42 }
 0x3f4   : > { %v1476_v31 = vrot.slane %v1475_v24, 1 }
 0x3f6   : > { %v1477_v11 = vadd.f32 %v1476_v31, %v1475_v24 }
 0x3f8   : > { %1783 = vrcp.f32 %v1477_v11 }
 0x402   : > { %v1784_v32 = vpop.eup %1783 }
 0x403   : > { %v1479_v62 = vmul.f32 %v1784_v32, %v1780_v23  ;;  %v1480_v43 = vmul.f32 %v1784_v32, %v1782_v10 }
 0x405   : > { %1481 = vst.msk [vmem:[%s306_s12] sm:$0xff] %vm1452_vm5, %v1479_v62 }
 0x406   : > { %1482 = vst.msk [vmem:[%s306_s12 + $0x8] sm:$0x3] %vm1454_vm4, %v1480_v43 }
 0x407 PF: > { %s17_s26 = sadd.s32 1, %s1807_s26   ;;  %s2272_s24 = smov %s1803_s25 }
 0x408   : > { %p14_p5 = scmp.ge.s32.totalorder %s17_s26, 4   ;;  %s2273_s25 = smov %s2275_s27 }
 0x40a   :  { %16 = sbr.rel (!%p14_p5) target bundleno = 2 (0x2), region = 86 }

</bundles_post_ra>
